<compile_context>
chip_gen: v5e
topology: v5e:2x2
jax: 0.10.0
libtpu: 0.0.40
codegen_flags: <defaults>
</compile_context>

<pallas_src>
import jax
import jax.numpy as jnp
import numpy as np
from jax.experimental import pallas as pl
from jax.experimental.pallas import tpu as pltpu

COLS = 1024            # lane-dense output width (multiple of 128)
MAX_BLOCK_ROWS = 512   # (512, 1024) f32 block = 2 MiB per buffer


def _quantize_kernel(vals_ref, mids_ref, x_ref, o_ref):
    # vals_ref: (V,)   sorted table, SMEM
    # mids_ref: (V-1,) midpoints between consecutive table values, SMEM
    # x_ref / o_ref: (block_rows, COLS) float32 tiles in VMEM
    x = x_ref[...]
    v = vals_ref.shape[0]

    # Start at the lowest value; each threshold crossed bumps to the next one.
    out = jnp.full(x.shape, vals_ref[0], dtype=x.dtype)
    for j in range(v - 1):
        hi = vals_ref[j + 1]   # hoisted scalar reads: one broadcast per tile
        mid = mids_ref[j]
        out = jnp.where(x > mid, hi, out)

    o_ref[...] = out


def learnable_fp_activation(x, fp_values):
    """Applies the learnable FP quantization activation elementwise."""
    sorted_vals = jnp.sort(fp_values)                       # matches torch.sort
    mids = (sorted_vals[:-1] + sorted_vals[1:]) * 0.5       # decision thresholds

    orig_shape = x.shape
    orig_dtype = x.dtype

    flat = x.reshape(-1)
    if flat.dtype != jnp.float32:
        flat = flat.astype(jnp.float32)
    n = flat.shape[0]

    # Pad only up to one row (COLS-1 elements); most shapes need no pad at all.
    pad = (-n) % COLS
    if pad:
        flat = jnp.pad(flat, (0, pad))
    rows = flat.shape[0] // COLS
    x2 = flat.reshape(rows, COLS)

    if rows <= MAX_BLOCK_ROWS:
        # Single full-extent block (no 8-row divisibility requirement).
        block_rows = rows
    else:
        block_rows = MAX_BLOCK_ROWS
    grid = pl.cdiv(rows, block_rows)   # partial last block handled by Pallas

    out2 = pl.pallas_call(
        _quantize_kernel,
        out_shape=jax.ShapeDtypeStruct((rows, COLS), jnp.float32),
        grid_spec=pl.GridSpec(
            grid=(grid,),
            in_specs=[
                pl.BlockSpec(memory_space=pltpu.MemorySpace.SMEM),  # vals
                pl.BlockSpec(memory_space=pltpu.MemorySpace.SMEM),  # mids
                pl.BlockSpec((block_rows, COLS), lambda i: (i, 0)),  # x tile
            ],
            out_specs=pl.BlockSpec((block_rows, COLS), lambda i: (i, 0)),
        ),
        compiler_params=pltpu.CompilerParams(
            dimension_semantics=("parallel",)   # megacore-shards slabs on v7x
        ),
    )(sorted_vals, mids, x2)

    flat_out = out2.reshape(-1)
    if pad:
        flat_out = flat_out[:n]
    out = flat_out.reshape(orig_shape)
    if out.dtype != orig_dtype:
        out = out.astype(orig_dtype)
    return out


def _reference(x, fp_values):
    vals = jnp.sort(fp_values)
    V = vals.shape[0]
    idx = jnp.searchsorted(vals, x, side="left")
    idx = jnp.clip(idx, 1, V - 1)
    high = vals[idx]
    low = vals[idx - 1]
    return jnp.where(jnp.abs(x - low) <= jnp.abs(x - high), low, high)


# TODO(synk): STEQuantize.backward (straight-through gradient) is not part of the
# forward pass and is not implemented here.

if __name__ == "__main__":
    # Deterministic parameter init (precision_bits=2): sorted unique init values.
    fp_values = jnp.array([-1.0, 0.0, 1.0, 4.0], dtype=jnp.float32)

    key = jax.random.PRNGKey(0)
    x = jax.random.normal(key, (2, 4, 16, 16), dtype=jnp.float32) * 3.0

    out = learnable_fp_activation(x, fp_values)
    out = jax.block_until_ready(out)

    ref = _reference(x, fp_values)
    np.testing.assert_allclose(np.asarray(out), np.asarray(ref), rtol=0, atol=0)

    print("KERNEL_OK")
</pallas_src>

<mosaic_0001>
module attributes {stable_mosaic.version = 11 : i64} {
  func.func @_quantize_kernel(%arg0: i32, %arg1: memref<4xf32, #tpu.memory_space<smem>>, %arg2: memref<3xf32, #tpu.memory_space<smem>>, %arg3: memref<2x1024xf32, #tpu.memory_space<vmem>>, %arg4: memref<2x1024xf32, #tpu.memory_space<vmem>>) attributes {dimension_semantics = [#tpu.dimension_semantics<parallel>], iteration_bounds = array<i64: 1>, scalar_prefetch = 0 : i64, scratch_operands = 0 : i64, tpu.core_type = #tpu.core_type<tc>, window_params = [{transform_indices = @transform_0, window_bounds = array<i64: 4>}, {transform_indices = @transform_1, window_bounds = array<i64: 3>}, {transform_indices = @transform_2, window_bounds = array<i64: 2, 1024>}, {transform_indices = @transform_3, window_bounds = array<i64: 2, 1024>}]} {
    %c0 = arith.constant 0 : index
    %c0_0 = arith.constant 0 : index
    %0 = vector.load %arg3[%c0, %c0_0] : memref<2x1024xf32, #tpu.memory_space<vmem>>, vector<2x1024xf32>
    %c0_1 = arith.constant 0 : index
    %1 = memref.load %arg1[%c0_1] : memref<4xf32, #tpu.memory_space<smem>>
    %2 = vector.broadcast %1 : f32 to vector<2x1024xf32>
    %c1 = arith.constant 1 : index
    %3 = memref.load %arg1[%c1] : memref<4xf32, #tpu.memory_space<smem>>
    %c0_2 = arith.constant 0 : index
    %4 = memref.load %arg2[%c0_2] : memref<3xf32, #tpu.memory_space<smem>>
    %5 = vector.broadcast %4 : f32 to vector<2x1024xf32>
    %6 = arith.cmpf ogt, %0, %5 : vector<2x1024xf32>
    %7 = vector.broadcast %3 : f32 to vector<2x1024xf32>
    %8 = arith.select %6, %7, %2 : vector<2x1024xi1>, vector<2x1024xf32>
    %c2 = arith.constant 2 : index
    %9 = memref.load %arg1[%c2] : memref<4xf32, #tpu.memory_space<smem>>
    %c1_3 = arith.constant 1 : index
    %10 = memref.load %arg2[%c1_3] : memref<3xf32, #tpu.memory_space<smem>>
    %11 = vector.broadcast %10 : f32 to vector<2x1024xf32>
    %12 = arith.cmpf ogt, %0, %11 : vector<2x1024xf32>
    %13 = vector.broadcast %9 : f32 to vector<2x1024xf32>
    %14 = arith.select %12, %13, %8 : vector<2x1024xi1>, vector<2x1024xf32>
    %c3 = arith.constant 3 : index
    %15 = memref.load %arg1[%c3] : memref<4xf32, #tpu.memory_space<smem>>
    %c2_4 = arith.constant 2 : index
    %16 = memref.load %arg2[%c2_4] : memref<3xf32, #tpu.memory_space<smem>>
    %17 = vector.broadcast %16 : f32 to vector<2x1024xf32>
    %18 = arith.cmpf ogt, %0, %17 : vector<2x1024xf32>
    %19 = vector.broadcast %15 : f32 to vector<2x1024xf32>
    %20 = arith.select %18, %19, %14 : vector<2x1024xi1>, vector<2x1024xf32>
    %c0_5 = arith.constant 0 : index
    %c0_6 = arith.constant 0 : index
    %21 = vector.load %arg4[%c0_5, %c0_6] : memref<2x1024xf32, #tpu.memory_space<vmem>>, vector<2x1024xf32>
    tpu.vector_store %arg4[%c0_5, %c0_6], %20 {strides = array<i32>} : memref<2x1024xf32, #tpu.memory_space<vmem>>, vector<2x1024xf32>,
    return
  }
  func.func @transform_0(%arg0: i32) -> i32 {
    %c0_i32 = arith.constant 0 : i32
    %c0_i32_0 = arith.constant 0 : i32
    return %c0_i32 : i32
  }
  func.func @transform_1(%arg0: i32) -> i32 {
    %c0_i32 = arith.constant 0 : i32
    %c0_i32_0 = arith.constant 0 : i32
    return %c0_i32 : i32
  }
  func.func @transform_2(%arg0: i32) -> (i32, i32) {
    %c0_i32 = arith.constant 0 : i32
    %c0_i32_0 = arith.constant 0 : i32
    return %arg0, %c0_i32 : i32, i32
  }
  func.func @transform_3(%arg0: i32) -> (i32, i32) {
    %c0_i32 = arith.constant 0 : i32
    %c0_i32_0 = arith.constant 0 : i32
    return %arg0, %c0_i32 : i32, i32
  }
}

</mosaic_0001>

<bundles_post_ra>
// kernel: tpu_custom_call.1
= control target key start
LH: loop header
LB: loop body
LE: loop exit
PB: predicated region body
PF: predicated region fallthrough
CT: control target
= control target key end

     0   :  { %8 = vsyncpa [#allocation5], 0  ;;  %s228_s0 = inlined_call_operand.hbm [shape: f32[4], index: 0, kind: input, shape index: {}]   ;;  %s229_s1 = inlined_call_operand.hbm [shape: f32[3], index: 1, kind: input, shape index: {}]   ;;  %s230_s2 = inlined_call_operand.hbm [shape: f32[2,1024], index: 2, kind: input, shape index: {}]   ;;  %s231_s3 = inlined_call_operand.hbm [shape: f32[2,1024], index: 3, kind: output, shape index: {}]  }
   0x1   :  { %9 = vsyncpa [#allocation7], 0 }
   0x2   :  { %10 = vsyncpa [#allocation3], 0 }
   0x3   :  { %11 = vsyncpa [#allocation4], 0  ;;  %s17_s14 = sshll.u32 %s228_s0, 4  ;;  %s26_s17 = sshll.u32 %s229_s1, 4  ;;  %s18_s14 = int_to_ptr.hbm [resolvable:$true] %s17_s14  ;;  %s27_s17 = int_to_ptr.hbm [resolvable:$true] %s26_s17 }
   0x4   :  { %s192_s18 = smov [#allocation2]   ;;  %s193_s19 = smov [#allocation6]  }
   0x5   :  { %20 = dma.hbm_to_smem %s18_s14, 16, %s192_s18, [#allocation5]  }
   0x6   :  { %29 = dma.hbm_to_smem %s27_s17, 16, %s193_s19, [#allocation7]  }
   0x7   :  { %s35_s22 = sshll.u32 %s230_s2, 4  ;;  %s194_s23 = smov [#allocation8]   ;;  %s36_s22 = int_to_ptr.hbm [resolvable:$true] %s35_s22 }
   0x8   :  { %s37_s24 = sshll.u32 %s194_s23, 4  ;;  %s38_s24 = int_to_ptr.vmem [resolvable:$true] %s37_s24 }
   0x9   :  { %40 = dma.hbm_to_vmem [thread:$0]  %s36_s22, 256, %s38_s24, [#allocation3]  }
   0xa   :  { %184 = dma.done.wait [#allocation5], 16  }
   0xb   :  { %185 = vsyncadd [#allocation5], 4294967280 }
   0xc   :  { %186 = dma.done.wait [#allocation7], 16  }
   0xd   :  { %187 = vsyncadd [#allocation7], 4294967280 }
   0xe   :  { %188 = dma.done.wait [#allocation3], 256  }
   0xf   :  { %189 = vsyncadd [#allocation3], 4294967040 }
  0x10   :  { %53 = sfence }
  0x11   :  { %s56_s0 = sld [smem:[#allocation2]]  ;;  %v54_v0 = vld [vmem:[#allocation8] sm:$0xff]  ;;  %v55_v1 = vld [vmem:[#allocation8 + $0x8] sm:$0xff]  ;;  %s195_s29 = smov [#allocation9]  }
  0x12   :  { %s103_s1 = sld [smem:[#allocation2 + $0x1]]  ;;  %s89_s30 = sshll.u32 %s195_s29, 4  ;;  %s90_s30 = int_to_ptr.vmem [resolvable:$true] %s89_s30 }
  0x13   :  { %s59_s25 = sld [smem:[#allocation6]]  ;;  %s91_s6 = sshll.u32 %s231_s3, 4  ;;  %s92_s6 = int_to_ptr.hbm [resolvable:$true] %s91_s6 }
  0x14   :  { %s104_s26 = sld [smem:[#allocation2 + $0x2]] }
  0x15   :  { %s105_s27 = sld [smem:[#allocation6 + $0x1]] }
  0x16   :  { %s106_s28 = sld [smem:[#allocation2 + $0x3]] }
  0x17   :  { %s107_s2 = sld [smem:[#allocation6 + $0x2]]  ;;  %v57_v2 = vstv %s56_s0 }
  0x18   :  { %v63_v3 = vstv %s103_s1 }
  0x19   :  { %v60_v4 = vstv %s59_s25 }
  0x1a   :  { %vm61_vm0 = vcmp.gt.f32.partialorder %v54_v0, %v60_v4  ;;  %v71_v5 = vstv %s104_s26  ;;  %vm62_vm1 = vcmp.gt.f32.partialorder %v55_v1, %v60_v4 }
  0x1b   :  { %v64_v6 = vsel %vm61_vm0, %v63_v3, %v57_v2  ;;  %v68_v7 = vstv %s105_s27  ;;  %v65_v8 = vsel %vm62_vm1, %v63_v3, %v57_v2 }
  0x1c   :  { %vm69_vm2 = vcmp.gt.f32.partialorder %v54_v0, %v68_v7  ;;  %v79_v9 = vstv %s106_s28  ;;  %vm70_vm3 = vcmp.gt.f32.partialorder %v55_v1, %v68_v7 }
  0x1d   :  { %v72_v10 = vsel %vm69_vm2, %v71_v5, %v64_v6  ;;  %v76_v11 = vstv %s107_s2  ;;  %v73_v12 = vsel %vm70_vm3, %v71_v5, %v65_v8 }
  0x1e   :  { %vm77_vm4 = vcmp.gt.f32.partialorder %v54_v0, %v76_v11  ;;  %vm78_vm5 = vcmp.gt.f32.partialorder %v55_v1, %v76_v11 }
  0x1f   :  { %v80_v13 = vsel %vm77_vm4, %v79_v9, %v72_v10  ;;  %v81_v14 = vsel %vm78_vm5, %v79_v9, %v73_v12 }
  0x20   :  { %82 = vst [vmem:[#allocation9] sm:$0xff] %v80_v13 }
  0x21   :  { %83 = vst [vmem:[#allocation9 + $0x8] sm:$0xff] %v81_v14 }
  0x22   :  { %94 = dma.vmem_to_hbm [thread:$0]  %s90_s30, 256, %s92_s6, [#allocation4]  }
  0x23   :  { %190 = dma.done.wait [#allocation4], 256  }
  0x24   :  { %191 = vsyncadd [#allocation4], 4294967040 }
  0x25   :  { %99 = vsyncpa [#allocation3], 1 }
  0x26   :  { %100 = vsyncpa [#allocation4], 1 }
  0x27   :  { %101 = vsyncpa [#allocation5], 1 }
  0x28   :  { %102 = vsyncpa [#allocation7], 1 }

</bundles_post_ra>
